<compile_context>
chip_gen: v6e
topology: v6e:2x2x1
jax: 0.10.0
libtpu: 0.0.40
codegen_flags: <defaults>
</compile_context>

<pallas_src>
import math
import numpy as np
import jax
import jax.numpy as jnp
from jax.experimental import pallas as pl
from jax.experimental.pallas import tpu as pltpu

_CASCADE_COEFFS = (0.5, 1.0, 2.0)


def build_gaussian_kernels(kernel_size, sigma):
    """Re-implements the module's __init__ weight construction.

    Returns (g1d, k2d, pad) where g1d[r] is the normalized 1-D separable factor of the
    r-th cascade kernel and k2d[r] is the normalized 2-D kernel (for the reference)."""
    if isinstance(kernel_size, (int, float)):
        kernel_size = [int(kernel_size), int(kernel_size)]
    assert kernel_size[0] == kernel_size[1], "module uses square kernels"
    K = int(kernel_size[0])
    pad = K // 2
    idx = np.arange(K, dtype=np.float64)
    mean = (K - 1) / 2.0
    g1d, k2d = [], []
    for c in _CASCADE_COEFFS:
        std = c * sigma
        g = (1.0 / (std * math.sqrt(2.0 * math.pi))) * np.exp(-(((idx - mean) / std) ** 2) / 2.0)
        k2 = np.outer(g, g)
        k2 = k2 / k2.sum()          # module's 2-D normalization
        g1 = g / g.sum()            # exact separable factors of the normalized 2-D kernel
        assert np.allclose(np.outer(g1, g1), k2, rtol=1e-12, atol=1e-15)
        g1d.append(g1)
        k2d.append(k2)
    return np.stack(g1d), np.stack(k2d), pad


def _reflect(s, n):
    if s < 0:
        return -s
    if s >= n:
        return 2 * (n - 1) - s
    return s


def build_band_matrices(g1d, H, W, Wp, pad):
    """Constant banded matrices with the reflect boundary and the /n_casc mean folded in.

    Aw_all: (W, n_casc*Wp)  -- horizontal pass, all cascades stacked on the lane axis.
    Ah_all: (n_casc, H, H)  -- vertical pass, one matrix per cascade.
    """
    n_casc, K = g1d.shape
    aw = np.zeros((n_casc, W, Wp), np.float64)
    ah = np.zeros((n_casc, H, H), np.float64)
    for r in range(n_casc):
        g = g1d[r]
        for w in range(W):
            for j in range(K):
                aw[r, _reflect(w + j - pad, W), w] += g[j]
        for u in range(H):
            for i in range(K):
                ah[r, u, _reflect(u + i - pad, H)] += g[i]
    aw = aw / float(n_casc)  # fold the final mean over the 3 cascades into the horizontal pass
    aw_all = np.concatenate([aw[r] for r in range(n_casc)], axis=1)
    return aw_all.astype(np.float32), ah.astype(np.float32)


def _make_kernel(n_casc, Wp):
    def kernel(x_ref, aw_ref, ah_ref, o_ref):
        # x_ref:  (T, H, W)   planes of this B*C tile
        # aw_ref: (W, n_casc*Wp)   constant horizontal banded matrices (reflect + /3 folded in)
        # ah_ref: (n_casc, H, H)   constant vertical banded matrices (reflect folded in)
        # o_ref:  (T, H, Wp)   lane-dense output (columns >= W are zero, sliced off outside)
        T = x_ref.shape[0]
        aw = aw_ref[...]
        for t in range(T):                       # static unroll over the few planes in this tile
            x_t = x_ref[t].astype(jnp.float32)                                   # (H, W)
            xh = jnp.dot(x_t, aw, preferred_element_type=jnp.float32)            # (H, 3*Wp)  MXU
            y = None
            for r in range(n_casc):
                part = jnp.dot(ah_ref[r], xh[:, r * Wp:(r + 1) * Wp],
                               preferred_element_type=jnp.float32)               # (H, Wp)  MXU
                y = part if y is None else y + part
            o_ref[t] = y.astype(o_ref.dtype)
    return kernel


def cascade_gaussian_smoothing(x, kernel_size, sigma, *, bc_tile=None):
    """x: (B, C, H, W); returns the module's forward output with identical semantics."""
    B, C, H, W = x.shape
    g1d, _, pad = build_gaussian_kernels(kernel_size, sigma)
    n_casc, K = g1d.shape
    assert K % 2 == 1, "odd kernel_size required (pad = K//2)"
    assert H > pad and W > pad, "reflect padding requires spatial dims > pad"

    Wp = ((W + 127) // 128) * 128            # lane-dense output width (sliced back below)
    aw_all, ah_all = build_band_matrices(g1d, H, W, Wp, pad)

    BC = B * C
    x2 = x.reshape(BC, H, W)
    itemsize = x.dtype.itemsize

    if bc_tile is None:
        # Keep the per-step (in + out) block a few MiB so double-buffered blocks + matmul
        # temporaries fit comfortably even in v7x's 64 MiB VMEM, while amortizing the
        # ~0.35us/step pipeline overhead over several planes.
        block_budget = 8 << 20
        per_plane = H * (W + Wp) * itemsize
        bc_tile = max(1, min(BC, 8, block_budget // max(1, per_plane)))
        if BC >= 2:                          # >= 2 grid programs so both v7x TCs get work
            bc_tile = min(bc_tile, pl.cdiv(BC, 2))
    bc_tile = int(max(1, min(int(bc_tile), BC)))
    while BC % bc_tile != 0:                 # divisor of BC -> no wasted OOB planes on last step
        bc_tile -= 1
    grid = (BC // bc_tile,)

    mat_bytes = (aw_all.size + ah_all.size) * 4
    block_bytes = bc_tile * H * (W + Wp) * itemsize
    temp_bytes = H * (n_casc + 2) * Wp * 4
    vmem_limit = int(min(64 << 20,
                         max(32 << 20, 2 * block_bytes + 2 * mat_bytes + temp_bytes + (8 << 20))))

    cost = pl.CostEstimate(
        flops=2 * BC * H * W * n_casc * Wp + 2 * BC * n_casc * H * H * Wp,
        transcendentals=0,
        bytes_accessed=(BC * H * W + BC * H * Wp) * itemsize + mat_bytes,
    )

    out = pl.pallas_call(
        _make_kernel(n_casc, Wp),
        out_shape=jax.ShapeDtypeStruct((BC, H, Wp), x.dtype),
        grid_spec=pltpu.PrefetchScalarGridSpec(
            num_scalar_prefetch=0,
            grid=grid,
            in_specs=[
                pl.BlockSpec((bc_tile, H, W), lambda i: (i, 0, 0)),
                pl.BlockSpec((W, n_casc * Wp), lambda i: (0, 0)),        # constant block: copied once
                pl.BlockSpec((n_casc, H, H), lambda i: (0, 0, 0)),       # constant block: copied once
            ],
            out_specs=pl.BlockSpec((bc_tile, H, Wp), lambda i: (i, 0, 0)),
        ),
        compiler_params=pltpu.CompilerParams(
            dimension_semantics=("parallel",),
            vmem_limit_bytes=vmem_limit,
        ),
        cost_estimate=cost,
    )(x2, jnp.asarray(aw_all), jnp.asarray(ah_all))

    out = out.reshape(B, C, H, Wp)
    return out[..., :W] if Wp != W else out


def reference_numpy(x_np, kernels_2d, pad):
    """Exact float64 re-implementation of the PyTorch forward (reflect pad + depthwise
    cross-correlation per cascade, averaged)."""
    B, C, H, W = x_np.shape
    K = kernels_2d.shape[-1]
    xp = np.pad(x_np, ((0, 0), (0, 0), (pad, pad), (pad, pad)), mode="reflect")
    acc = np.zeros_like(x_np)
    for k2 in kernels_2d:
        for i in range(K):
            for j in range(K):
                acc += k2[i, j] * xp[:, :, i:i + H, j:j + W]
    return acc / kernels_2d.shape[0]


if __name__ == "__main__":
    kernel_size = 5
    sigma = 2.0

    key = jax.random.PRNGKey(0)
    # Module hard-codes weight.repeat(3, 1, 1, 1) => input must have 3 channels.
    x = jax.random.normal(key, (2, 3, 16, 16), dtype=jnp.float32)

    out = jax.block_until_ready(cascade_gaussian_smoothing(x, kernel_size, sigma))

    _, k2d, pad = build_gaussian_kernels(kernel_size, sigma)
    ref = reference_numpy(np.asarray(x, np.float64), k2d, pad)

    assert out.shape == (2, 3, 16, 16), out.shape
    # f32 MXU matmul vs float64 reference; margin covers accumulation-order rounding.
    np.testing.assert_allclose(np.asarray(out, np.float64), ref, rtol=1e-4, atol=1e-4)

    print("KERNEL_OK")
</pallas_src>

<mosaic_0001>
module attributes {stable_mosaic.version = 11 : i64} {
  func.func @kernel(%arg0: i32, %arg1: memref<3x16x16xf32, #tpu.memory_space<vmem>>, %arg2: memref<16x384xf32, #tpu.memory_space<vmem>>, %arg3: memref<3x16x16xf32, #tpu.memory_space<vmem>>, %arg4: memref<3x16x128xf32, #tpu.memory_space<vmem>>) attributes {dimension_semantics = [#tpu.dimension_semantics<parallel>], iteration_bounds = array<i64: 2>, scalar_prefetch = 0 : i64, scratch_operands = 0 : i64, tpu.core_type = #tpu.core_type<tc>, window_params = [{transform_indices = @transform_0, window_bounds = array<i64: 3, 16, 16>}, {pipeline_mode = #tpu.pipeline_mode<synchronous>, transform_indices = @transform_1, window_bounds = array<i64: 16, 384>}, {pipeline_mode = #tpu.pipeline_mode<synchronous>, transform_indices = @transform_2, window_bounds = array<i64: 3, 16, 16>}, {transform_indices = @transform_3, window_bounds = array<i64: 3, 16, 128>}]} {
    %c0 = arith.constant 0 : index
    %c0_0 = arith.constant 0 : index
    %0 = vector.load %arg2[%c0, %c0_0] : memref<16x384xf32, #tpu.memory_space<vmem>>, vector<16x384xf32>
    %c0_1 = arith.constant 0 : index
    %c0_2 = arith.constant 0 : index
    %c0_3 = arith.constant 0 : index
    %1 = vector.load %arg1[%c0_1, %c0_2, %c0_3] : memref<3x16x16xf32, #tpu.memory_space<vmem>>, vector<1x16x16xf32>
    %2 = vector.shape_cast %1 : vector<1x16x16xf32> to vector<16x16xf32>
    %cst = arith.constant dense<0.000000e+00> : vector<16x384xf32>
    %3 = tpu.matmul %2, %0, %cst {dimension_numbers = #tpu.dot_dimension_numbers<[1], [0], [0], [1], [0, 0, 1, 1], [], []>} : vector<16x16xf32>, vector<16x384xf32>, vector<16x384xf32> -> vector<16x384xf32>
    %c0_4 = arith.constant 0 : index
    %c0_5 = arith.constant 0 : index
    %c0_6 = arith.constant 0 : index
    %4 = vector.load %arg3[%c0_4, %c0_5, %c0_6] : memref<3x16x16xf32, #tpu.memory_space<vmem>>, vector<1x16x16xf32>
    %5 = vector.shape_cast %4 : vector<1x16x16xf32> to vector<16x16xf32>
    %6 = vector.extract_strided_slice %3 {offsets = [0, 0], sizes = [16, 128], strides = [1, 1]} : vector<16x384xf32> to vector<16x128xf32>
    %cst_7 = arith.constant dense<0.000000e+00> : vector<16x128xf32>
    %7 = tpu.matmul %5, %6, %cst_7 {dimension_numbers = #tpu.dot_dimension_numbers<[1], [0], [0], [1], [0, 0, 1, 1], [], []>} : vector<16x16xf32>, vector<16x128xf32>, vector<16x128xf32> -> vector<16x128xf32>
    %c1 = arith.constant 1 : index
    %c0_8 = arith.constant 0 : index
    %c0_9 = arith.constant 0 : index
    %8 = vector.load %arg3[%c1, %c0_8, %c0_9] : memref<3x16x16xf32, #tpu.memory_space<vmem>>, vector<1x16x16xf32>
    %9 = vector.shape_cast %8 : vector<1x16x16xf32> to vector<16x16xf32>
    %10 = vector.extract_strided_slice %3 {offsets = [0, 128], sizes = [16, 128], strides = [1, 1]} : vector<16x384xf32> to vector<16x128xf32>
    %cst_10 = arith.constant dense<0.000000e+00> : vector<16x128xf32>
    %11 = tpu.matmul %9, %10, %cst_10 {dimension_numbers = #tpu.dot_dimension_numbers<[1], [0], [0], [1], [0, 0, 1, 1], [], []>} : vector<16x16xf32>, vector<16x128xf32>, vector<16x128xf32> -> vector<16x128xf32>
    %12 = arith.addf %7, %11 : vector<16x128xf32>
    %c2 = arith.constant 2 : index
    %c0_11 = arith.constant 0 : index
    %c0_12 = arith.constant 0 : index
    %13 = vector.load %arg3[%c2, %c0_11, %c0_12] : memref<3x16x16xf32, #tpu.memory_space<vmem>>, vector<1x16x16xf32>
    %14 = vector.shape_cast %13 : vector<1x16x16xf32> to vector<16x16xf32>
    %15 = vector.extract_strided_slice %3 {offsets = [0, 256], sizes = [16, 128], strides = [1, 1]} : vector<16x384xf32> to vector<16x128xf32>
    %cst_13 = arith.constant dense<0.000000e+00> : vector<16x128xf32>
    %16 = tpu.matmul %14, %15, %cst_13 {dimension_numbers = #tpu.dot_dimension_numbers<[1], [0], [0], [1], [0, 0, 1, 1], [], []>} : vector<16x16xf32>, vector<16x128xf32>, vector<16x128xf32> -> vector<16x128xf32>
    %17 = arith.addf %12, %16 : vector<16x128xf32>
    %c0_14 = arith.constant 0 : index
    %c0_15 = arith.constant 0 : index
    %c0_16 = arith.constant 0 : index
    %18 = vector.load %arg4[%c0_14, %c0_15, %c0_16] : memref<3x16x128xf32, #tpu.memory_space<vmem>>, vector<1x16x128xf32>
    %19 = vector.shape_cast %18 : vector<1x16x128xf32> to vector<16x128xf32>
    %20 = vector.shape_cast %17 : vector<16x128xf32> to vector<1x16x128xf32>
    tpu.vector_store %arg4[%c0_14, %c0_15, %c0_16], %20 {strides = array<i32>} : memref<3x16x128xf32, #tpu.memory_space<vmem>>, vector<1x16x128xf32>,
    %c1_17 = arith.constant 1 : index
    %c0_18 = arith.constant 0 : index
    %c0_19 = arith.constant 0 : index
    %21 = vector.load %arg1[%c1_17, %c0_18, %c0_19] : memref<3x16x16xf32, #tpu.memory_space<vmem>>, vector<1x16x16xf32>
    %22 = vector.shape_cast %21 : vector<1x16x16xf32> to vector<16x16xf32>
    %cst_20 = arith.constant dense<0.000000e+00> : vector<16x384xf32>
    %23 = tpu.matmul %22, %0, %cst_20 {dimension_numbers = #tpu.dot_dimension_numbers<[1], [0], [0], [1], [0, 0, 1, 1], [], []>} : vector<16x16xf32>, vector<16x384xf32>, vector<16x384xf32> -> vector<16x384xf32>
    %c0_21 = arith.constant 0 : index
    %c0_22 = arith.constant 0 : index
    %c0_23 = arith.constant 0 : index
    %24 = vector.load %arg3[%c0_21, %c0_22, %c0_23] : memref<3x16x16xf32, #tpu.memory_space<vmem>>, vector<1x16x16xf32>
    %25 = vector.shape_cast %24 : vector<1x16x16xf32> to vector<16x16xf32>
    %26 = vector.extract_strided_slice %23 {offsets = [0, 0], sizes = [16, 128], strides = [1, 1]} : vector<16x384xf32> to vector<16x128xf32>
    %cst_24 = arith.constant dense<0.000000e+00> : vector<16x128xf32>
    %27 = tpu.matmul %25, %26, %cst_24 {dimension_numbers = #tpu.dot_dimension_numbers<[1], [0], [0], [1], [0, 0, 1, 1], [], []>} : vector<16x16xf32>, vector<16x128xf32>, vector<16x128xf32> -> vector<16x128xf32>
    %c1_25 = arith.constant 1 : index
    %c0_26 = arith.constant 0 : index
    %c0_27 = arith.constant 0 : index
    %28 = vector.load %arg3[%c1_25, %c0_26, %c0_27] : memref<3x16x16xf32, #tpu.memory_space<vmem>>, vector<1x16x16xf32>
    %29 = vector.shape_cast %28 : vector<1x16x16xf32> to vector<16x16xf32>
    %30 = vector.extract_strided_slice %23 {offsets = [0, 128], sizes = [16, 128], strides = [1, 1]} : vector<16x384xf32> to vector<16x128xf32>
    %cst_28 = arith.constant dense<0.000000e+00> : vector<16x128xf32>
    %31 = tpu.matmul %29, %30, %cst_28 {dimension_numbers = #tpu.dot_dimension_numbers<[1], [0], [0], [1], [0, 0, 1, 1], [], []>} : vector<16x16xf32>, vector<16x128xf32>, vector<16x128xf32> -> vector<16x128xf32>
    %32 = arith.addf %27, %31 : vector<16x128xf32>
    %c2_29 = arith.constant 2 : index
    %c0_30 = arith.constant 0 : index
    %c0_31 = arith.constant 0 : index
    %33 = vector.load %arg3[%c2_29, %c0_30, %c0_31] : memref<3x16x16xf32, #tpu.memory_space<vmem>>, vector<1x16x16xf32>
    %34 = vector.shape_cast %33 : vector<1x16x16xf32> to vector<16x16xf32>
    %35 = vector.extract_strided_slice %23 {offsets = [0, 256], sizes = [16, 128], strides = [1, 1]} : vector<16x384xf32> to vector<16x128xf32>
    %cst_32 = arith.constant dense<0.000000e+00> : vector<16x128xf32>
    %36 = tpu.matmul %34, %35, %cst_32 {dimension_numbers = #tpu.dot_dimension_numbers<[1], [0], [0], [1], [0, 0, 1, 1], [], []>} : vector<16x16xf32>, vector<16x128xf32>, vector<16x128xf32> -> vector<16x128xf32>
    %37 = arith.addf %32, %36 : vector<16x128xf32>
    %c1_33 = arith.constant 1 : index
    %c0_34 = arith.constant 0 : index
    %c0_35 = arith.constant 0 : index
    %38 = vector.load %arg4[%c1_33, %c0_34, %c0_35] : memref<3x16x128xf32, #tpu.memory_space<vmem>>, vector<1x16x128xf32>
    %39 = vector.shape_cast %38 : vector<1x16x128xf32> to vector<16x128xf32>
    %40 = vector.shape_cast %37 : vector<16x128xf32> to vector<1x16x128xf32>
    tpu.vector_store %arg4[%c1_33, %c0_34, %c0_35], %40 {strides = array<i32>} : memref<3x16x128xf32, #tpu.memory_space<vmem>>, vector<1x16x128xf32>,
    %c2_36 = arith.constant 2 : index
    %c0_37 = arith.constant 0 : index
    %c0_38 = arith.constant 0 : index
    %41 = vector.load %arg1[%c2_36, %c0_37, %c0_38] : memref<3x16x16xf32, #tpu.memory_space<vmem>>, vector<1x16x16xf32>
    %42 = vector.shape_cast %41 : vector<1x16x16xf32> to vector<16x16xf32>
    %cst_39 = arith.constant dense<0.000000e+00> : vector<16x384xf32>
    %43 = tpu.matmul %42, %0, %cst_39 {dimension_numbers = #tpu.dot_dimension_numbers<[1], [0], [0], [1], [0, 0, 1, 1], [], []>} : vector<16x16xf32>, vector<16x384xf32>, vector<16x384xf32> -> vector<16x384xf32>
    %c0_40 = arith.constant 0 : index
    %c0_41 = arith.constant 0 : index
    %c0_42 = arith.constant 0 : index
    %44 = vector.load %arg3[%c0_40, %c0_41, %c0_42] : memref<3x16x16xf32, #tpu.memory_space<vmem>>, vector<1x16x16xf32>
    %45 = vector.shape_cast %44 : vector<1x16x16xf32> to vector<16x16xf32>
    %46 = vector.extract_strided_slice %43 {offsets = [0, 0], sizes = [16, 128], strides = [1, 1]} : vector<16x384xf32> to vector<16x128xf32>
    %cst_43 = arith.constant dense<0.000000e+00> : vector<16x128xf32>
    %47 = tpu.matmul %45, %46, %cst_43 {dimension_numbers = #tpu.dot_dimension_numbers<[1], [0], [0], [1], [0, 0, 1, 1], [], []>} : vector<16x16xf32>, vector<16x128xf32>, vector<16x128xf32> -> vector<16x128xf32>
    %c1_44 = arith.constant 1 : index
    %c0_45 = arith.constant 0 : index
    %c0_46 = arith.constant 0 : index
    %48 = vector.load %arg3[%c1_44, %c0_45, %c0_46] : memref<3x16x16xf32, #tpu.memory_space<vmem>>, vector<1x16x16xf32>
    %49 = vector.shape_cast %48 : vector<1x16x16xf32> to vector<16x16xf32>
    %50 = vector.extract_strided_slice %43 {offsets = [0, 128], sizes = [16, 128], strides = [1, 1]} : vector<16x384xf32> to vector<16x128xf32>
    %cst_47 = arith.constant dense<0.000000e+00> : vector<16x128xf32>
    %51 = tpu.matmul %49, %50, %cst_47 {dimension_numbers = #tpu.dot_dimension_numbers<[1], [0], [0], [1], [0, 0, 1, 1], [], []>} : vector<16x16xf32>, vector<16x128xf32>, vector<16x128xf32> -> vector<16x128xf32>
    %52 = arith.addf %47, %51 : vector<16x128xf32>
    %c2_48 = arith.constant 2 : index
    %c0_49 = arith.constant 0 : index
    %c0_50 = arith.constant 0 : index
    %53 = vector.load %arg3[%c2_48, %c0_49, %c0_50] : memref<3x16x16xf32, #tpu.memory_space<vmem>>, vector<1x16x16xf32>
    %54 = vector.shape_cast %53 : vector<1x16x16xf32> to vector<16x16xf32>
    %55 = vector.extract_strided_slice %43 {offsets = [0, 256], sizes = [16, 128], strides = [1, 1]} : vector<16x384xf32> to vector<16x128xf32>
    %cst_51 = arith.constant dense<0.000000e+00> : vector<16x128xf32>
    %56 = tpu.matmul %54, %55, %cst_51 {dimension_numbers = #tpu.dot_dimension_numbers<[1], [0], [0], [1], [0, 0, 1, 1], [], []>} : vector<16x16xf32>, vector<16x128xf32>, vector<16x128xf32> -> vector<16x128xf32>
    %57 = arith.addf %52, %56 : vector<16x128xf32>
    %c2_52 = arith.constant 2 : index
    %c0_53 = arith.constant 0 : index
    %c0_54 = arith.constant 0 : index
    %58 = vector.load %arg4[%c2_52, %c0_53, %c0_54] : memref<3x16x128xf32, #tpu.memory_space<vmem>>, vector<1x16x128xf32>
    %59 = vector.shape_cast %58 : vector<1x16x128xf32> to vector<16x128xf32>
    %60 = vector.shape_cast %57 : vector<16x128xf32> to vector<1x16x128xf32>
    tpu.vector_store %arg4[%c2_52, %c0_53, %c0_54], %60 {strides = array<i32>} : memref<3x16x128xf32, #tpu.memory_space<vmem>>, vector<1x16x128xf32>,
    return
  }
  func.func @transform_0(%arg0: i32) -> (i32, i32, i32) {
    %c0_i32 = arith.constant 0 : i32
    %c0_i32_0 = arith.constant 0 : i32
    %c0_i32_1 = arith.constant 0 : i32
    return %arg0, %c0_i32, %c0_i32_0 : i32, i32, i32
  }
  func.func @transform_1(%arg0: i32) -> (i32, i32) {
    %c0_i32 = arith.constant 0 : i32
    %c0_i32_0 = arith.constant 0 : i32
    %c0_i32_1 = arith.constant 0 : i32
    return %c0_i32, %c0_i32_0 : i32, i32
  }
  func.func @transform_2(%arg0: i32) -> (i32, i32, i32) {
    %c0_i32 = arith.constant 0 : i32
    %c0_i32_0 = arith.constant 0 : i32
    %c0_i32_1 = arith.constant 0 : i32
    %c0_i32_2 = arith.constant 0 : i32
    return %c0_i32, %c0_i32_0, %c0_i32_1 : i32, i32, i32
  }
  func.func @transform_3(%arg0: i32) -> (i32, i32, i32) {
    %c0_i32 = arith.constant 0 : i32
    %c0_i32_0 = arith.constant 0 : i32
    %c0_i32_1 = arith.constant 0 : i32
    return %arg0, %c0_i32, %c0_i32_0 : i32, i32, i32
  }
}

</mosaic_0001>

<bundles_post_ra>
// kernel: tpu_custom_call.1
= control target key start
LH: loop header
LB: loop body
LE: loop exit
PB: predicated region body
PF: predicated region fallthrough
CT: control target
= control target key end

     0   :  { %8 = vsyncpa [#allocation3], 0  ;;  %s2344_s0 = inlined_call_operand.hbm [shape: f32[6,16,16], index: 0, kind: input, shape index: {}]   ;;  %s2345_s1 = inlined_call_operand.hbm [shape: f32[16,384], index: 1, kind: input, shape index: {}]   ;;  %s2346_s2 = inlined_call_operand.hbm [shape: f32[3,16,16], index: 2, kind: input, shape index: {}]   ;;  %s2347_s3 = inlined_call_operand.hbm [shape: f32[6,16,128], index: 3, kind: output, shape index: {}]  }
   0x1   :  { %10 = vsyncpa [#allocation3 + $0x1], 0 }
   0x2   :  { %11 = vsyncpa [#allocation6], 0 }
   0x3   :  { %12 = vsyncpa [#allocation4], 0 }
   0x4   :  { %14 = vsyncpa [#allocation4 + $0x1], 0  ;;  %s2027_s12 = smov 0   ;;  %s2029_s13 = smov 0  }
   0x5   :  { %s2031_s14 = smov 0   ;;  %s2033_s15 = smov 0  }
   0x6 LB: > { %s2048_s16 = sadd.s32 4294967295, %s1994_s15   ;;  %s1580_s17 = sadd.s32 4294967294, %s1994_s15   ;;  %s1994_s15 = sphi %s2033_s15, %s2369_s15   ;;  %s1990_s14 = sphi %s2031_s14, %s2368_s14   ;;  %s1986_s13 = sphi %s2029_s13, %s2367_s13   ;;  %s1982_s12 = sphi %s2027_s12, %s2366_s12  }
   0x7   : > { %p40_p0 = scmp.ne.s32.totalorder %s1986_s13, %s1982_s12  ;;  %p2348_p1 = scmp.eq.s32.totalorder %s2048_s16, 0 }
   0x8   : > { %p112_p3 = scmp.eq.s32.totalorder %s1580_s17, 1  ;;  %p1581_p5 = scmp.ge.s32.totalorder %s1994_s15, 1 }
   0x9   : > { %p2057_p4 = por %p2348_p1, %p40_p0  ;;  %p119_p7 = scmp.lt.s32.totalorder %s1994_s15, 3 }
   0xa   : > { %p2062_p6 = por %p112_p3, %p40_p0  ;;  %s1996_s21 = smov [#allocation5]  }
   0xb   : > { %s2352_s18 = scalar_select %p2057_p4, 1, 0 }
   0xc   : > { %s2353_s19 = scalar_select %p2062_p6, 1, 0 }
   0xd   : > { %p2067_p8 = pnand %p1581_p5, %p119_p7  ;;  %s131_s22 = sshll.u32 %s1996_s21, 4  ;;  %s132_s22 = int_to_ptr.vmem [resolvable:$true] %s131_s22 }
   0xe   : > { %s1997_s24 = smov [#allocation7]   ;;  %s1857_s26 = scalar_lea.vmem %s132_s22, 768 }
   0xf   : > { %s2354_s20 = scalar_select %p2067_p8, 1, 0 }
  0x10   : > { %p1784_p9 = pneg %p2067_p8  ;;  %s144_s25 = sshll.u32 %s1997_s24, 4  ;;  %s145_s25 = int_to_ptr.vmem [resolvable:$true] %s144_s25 }
  0x11   : > { %p1858_p13 = scmp.ne.s32.totalorder %s132_s22, %s1857_s26  ;;  %p1865_p5 = scmp.lt.s32.totalorder %s132_s22, %s132_s22 }
  0x12   : > { %p2076_p11 = pnand %p1784_p9, %p2348_p1  ;;  %p1866_p7 = scmp.lt.s32.totalorder %s1857_s26, %s1857_s26 }
  0x14   : > { %p1848_p12 = pneg %p2076_p11  ;;  %p1867_p10 = por %p1866_p7, %p1865_p5 }
  0x16   : > { %p1860_p0 = pnand %p1858_p13, %p1848_p12 }
  0x18   : > { %p1861_p3 = pneg %p1860_p0 }
  0x1a   : > { %p1868_p9 = pnand %p1867_p10, %p1861_p3 }
  0x1c   : > { %1871 = shalt.err (!%p1868_p9)
}
  0x1d   : > { %s1998_s27 = smov 384   ;;  %s1999_s28 = smov 24  }
  0x1e   : > { %1787 = dma.hbm_to_vmem [thread:$0]  (!%p2076_p11), %s2345_s1, 768, %s132_s22, [#allocation6], %s1998_s27, %s1998_s27, %s1999_s28  }
  0x1f   : > { %s1883_s4 = scalar_lea.vmem %s145_s25, 768  ;;  %p1891_p2 = scmp.lt.s32.totalorder %s145_s25, %s145_s25 }
  0x20   : > { %p1884_p1 = scmp.ne.s32.totalorder %s145_s25, %s1883_s4  ;;  %p1892_p6 = scmp.lt.s32.totalorder %s1883_s4, %s1883_s4 }
  0x22   : > { %p1886_p13 = pnand %p1884_p1, %p1848_p12  ;;  %p1893_p5 = por %p1892_p6, %p1891_p2 }
  0x24   : > { %p1887_p0 = pneg %p1886_p13 }
  0x26   : > { %p1894_p10 = pnand %p1893_p5, %p1887_p0 }
  0x28   : > { %1897 = shalt.err (!%p1894_p10)
}
  0x29   : > { %s2000_s5 = smov 128   ;;  %s2001_s6 = smov 8  }
  0x2a   : > { %1790 = dma.hbm_to_vmem [thread:$0]  (!%p2076_p11), %s2346_s2, 768, %s145_s25, [#allocation6], %s2000_s5, %s2000_s5, %s2001_s6  }
  0x2b   : > { %s2102_s9 = sadd.s32 1, %s1994_s15   ;;  %s27_s11 = sadd.s32 1, %s1990_s14 }
  0x2c   : > { %s24_s10 = ssub.s32 %s1994_s15, %s2102_s9  ;;  %p34_p2 = scmp.ne.s32.totalorder %s1990_s14, %s1986_s13 }
  0x2d   : > { %p25_p1 = scmp.eq.s32.totalorder %s24_s10, 0  ;;  %p35_p6 = scmp.eq.s32.totalorder %s1994_s15, 0 }
  0x2e   : > { %p2356_p3 = scmp.eq.s32.totalorder %s2048_s16, 1  ;;  %p1801_p9 = scmp.lt.s32.totalorder %s1994_s15, 2 }
  0x2f   : > { %s2111_s17 = scalar_select %p25_p1, %s1990_s14, %s27_s11  }
  0x30   : > { %p36_p12 = por %p35_p6, %p34_p2  ;;  %p2115_p7 = por %p2356_p3, %p34_p2 }
  0x31   : > { %s158_s22 = sand.u32 1, %s1990_s14   ;;  %s1636_s24 = smul.u32 768, %s1994_s15 }
  0x32   : > { %s2357_s21 = scalar_select %p2115_p7, 1, 0 }
  0x33   : > { %s1770_s23 = smul.u32 48, %s158_s22  ;;  %p2122_p11 = pnand %p1801_p9, %p36_p12 }
  0x34   : > { %s2129_s28 = scalar_lea.hbm %s2344_s0, %s1636_s24  ;;  %s2133_s4 = scalar_lea.sflag [#allocation3], %s158_s22 }
  0x35   : > { %s162_s29 = scalar_lea.vmem [#allocation2], %s1770_s23  ;;  %s1898_s7 = scalar_lea.hbm %s2129_s28, 768 }
  0x36   : > { %s170_s30 = sshll.u32 %s162_s29, 4  ;;  %p1899_p13 = scmp.ne.s32.totalorder %s2129_s28, %s1898_s7  ;;  %s2131_s30 = int_to_ptr.vmem [resolvable:$true] %s170_s30 }
  0x37   : > { %p1900_p0 = pneg %p2122_p11  ;;  %s1903_s11 = scalar_lea.hbm %s2344_s0, 1536 }
  0x38   : > { %p1904_p1 = scmp.lt.s32.totalorder %s2129_s28, %s2344_s0  ;;  %p1905_p2 = scmp.lt.s32.totalorder %s1903_s11, %s1898_s7 }
  0x39   : > { %p1901_p5 = pnand %p1900_p0, %p1899_p13 }
  0x3a   : > { %p1906_p6 = por %p1905_p2, %p1904_p1 }
  0x3b   : > { %p1902_p10 = pneg %p1901_p5 }
  0x3d   : > { %p1907_p12 = pnand %p1906_p6, %p1902_p10 }
  0x3f   : > { %1910 = shalt.err (!%p1907_p12)
}
  0x40   : > { %s1911_s22 = scalar_lea.vmem %s2131_s30, 768  ;;  %s2002_s23 = smov [#allocation2]  }
  0x41   : > { %p1912_p3 = scmp.ne.s32.totalorder %s2131_s30, %s1911_s22  ;;  %s1916_s27 = sshll.u32 %s2002_s23, 4  ;;  %s1917_s27 = int_to_ptr.vmem [resolvable:$false] %s1916_s27 }
  0x42   : > { %s1918_s29 = scalar_lea.vmem %s1917_s27, 1536  ;;  %p1919_p5 = scmp.lt.s32.totalorder %s2131_s30, %s1917_s27 }
  0x43   : > { %p1914_p9 = pnand %p1912_p3, %p1900_p0  ;;  %p1920_p7 = scmp.lt.s32.totalorder %s1918_s29, %s1911_s22 }
  0x45   : > { %p1915_p13 = pneg %p1914_p9  ;;  %p1921_p4 = por %p1920_p7, %p1919_p5 }
  0x47   : > { %p1922_p8 = pnand %p1921_p4, %p1915_p13 }
  0x49   : > { %1925 = shalt.err (!%p1922_p8)
}
  0x4a   : > { %1794 = dma.hbm_to_vmem [thread:$0]  (!%p2122_p11), %s2129_s28, 768, %s2131_s30, %s2133_s4, %s2000_s5, %s2000_s5, %s2001_s6  }
  0x4b   : > { %p2359_p0 = scmp.ne.s32.totalorder %s2354_s20, 0 }
  0x4c   : > { %s2160_s7 = sand.u32 (!%p2359_p0), 1, %s1986_s13   ;;  %p2360_p4 = scmp.ne.s32.totalorder (!%p2359_p0), %s2352_s18, 0 }
  0x4d   : > { %182 = sbr.rel (%p2359_p0) target bundleno = 923 (0x39b), region = 32  ;;  %s185_s10 = scalar_lea.sflag (!%p2359_p0), [#allocation3], %s2160_s7 }
  0x4e   : > { %s1771_s8 = smul.u32 (!%p2359_p0), 48, %s2160_s7 }
  0x50   : > { %s2166_s25 = scalar_lea.vmem (!%p2359_p0), [#allocation2], %s1771_s8 }
  0x52   : > { %1969 = dma.done.wait (%p2360_p4), %s185_s10, 768  }
  0x53   : > { %1971 = vsyncadd (%p2360_p4), %s185_s10, 4294966528  ;;  %p2361_p8 = scmp.eq.s32.totalorder %s2048_s16, 0 }
  0x55   : > { %1973 = dma.done.wait (%p2361_p8), [#allocation6], 1536   ;;  %p2362_p7 = pmov %p2361_p8 }
  0x56   : > { %v2003_v0 = vmov 0.0   ;;  %v2177_v1 = vld [vmem:[#allocation5 + $0x20] sm:$0xff]  ;;  %v2179_v2 = vld [vmem:[#allocation5 + $0x18] sm:$0xff]  ;;  %v2181_v3 = vld [vmem:[#allocation5 + $0x8] sm:$0xff]  ;;  %vm229_vm0 = vcmask 130048   ;;  %s2250_s18 = scalar_lea.vmem [#allocation8], %s1771_s8 }
  0x57   : > { %1975 = vsyncadd (%p2362_p7), [#allocation6], 4294965760  ;;  %300 = vmatprep.mubr.f32.mxu0 %v2003_v0  ;;  %264 = vmatprep.subr.mxu0 %v2177_v1  ;;  %v2184_v4 = vld [vmem:[#allocation5] sm:$0xff]  ;;  %v2188_v6 = vld [vmem:[#allocation5 + $0x28] sm:$0xff]  ;;  %s1488_s20 = sshll.u32 %s2250_s18, 4  ;;  %s1637_s5 = smul.u32 768, %s2048_s16  ;;  %s2294_s20 = int_to_ptr.vmem [resolvable:$true] %s1488_s20 }
  0x58   : > { %v227_v5 = vld [vmem:[%s2166_s25] sm:$0xff]  ;;  %265 = vmatpush1.msra.mxu0 %v2179_v2  ;;  %1686 = vmatprep.subr.mxu1 %v2188_v6  ;;  %v228_v8 = vld [vmem:[%s2166_s25 + $0x8] sm:$0xff]  ;;  %v1600_v19 = vld [vmem:[%s2166_s25 + $0x10] sm:$0xff]  ;;  %s1474_s4 = scalar_lea.sflag [#allocation4], %s2160_s7  ;;  %s1926_s16 = scalar_lea.vmem %s2294_s20, 768 }
  0x59   : > { %v2190_v7 = vld [vmem:[#allocation5 + $0x10] sm:$0xff]  ;;  %1690 = vmatprep.mubr.msk.f32.mxu1 %vm229_vm0, %v227_v5  ;;  %266 = vmatprep.subr.mxu0 %v2181_v3  ;;  %v2208_v10 = vld [vmem:[#allocation7 + $0x10] sm:$0xff]  ;;  %v2212_v15 = vld [vmem:[#allocation7 + $0x8] sm:$0xff]  ;;  %s2299_s30 = scalar_lea.hbm %s2347_s3, %s1637_s5  ;;  %p1927_p11 = scmp.ne.s32.totalorder %s2294_s20, %s1926_s16 }
  0x5a   : > { %267 = vmatpush1.msra.mxu0 %v2184_v4  ;;  %1687 = vmatpush3.msra.mxu1 %v2188_v6  ;;  %v2204_v9 = vld [vmem:[#allocation7] sm:$0xff]  ;;  %v2214_v17 = vld [vmem:[#allocation7 + $0x18] sm:$0xff]  ;;  %v2228_v21 = vld [vmem:[#allocation7 + $0x28] sm:$0xff]  ;;  %p2363_p10 = scmp.ne.s32.totalorder %s2357_s21, 0  ;;  %s2004_s11 = smov [#allocation8]  }
  0x5b   : > { %1590 = vmatmul.mubr.msk.f32.vlgmr.msra.gmra.mxu0 %vm229_vm0, %v227_v5  ;;  %1688 = vmatprep.subr.mxu1 %v2190_v7  ;;  %v2225_v20 = vld [vmem:[#allocation7 + $0x20] sm:$0xff]  ;;  %v1601_v22 = vld [vmem:[%s2166_s25 + $0x18] sm:$0xff]  ;;  %v1615_v40 = vld [vmem:[%s2166_s25 + $0x28] sm:$0xff]  ;;  %s1930_s24 = sshll.u32 %s2004_s11, 4  ;;  %s1931_s24 = int_to_ptr.vmem [resolvable:$false] %s1930_s24 }
  0x5c   : > { %306 = vmatprep.mubr.f32.mxu0 %v2003_v0  ;;  %1689 = vmatpush3.msra.mxu1 %v2190_v7  ;;  %v1614_v39 = vld [vmem:[%s2166_s25 + $0x20] sm:$0xff]  ;;  %p1928_p1 = pnand %p1927_p11, %p2363_p10  ;;  %s1932_s26 = scalar_lea.vmem %s1931_s24, 1536 }
  0x5d   : > { %1691 = vmatmul.mubr.msk.f32.vlgmr.msra.gmra.mxu1 %vm229_vm0, %v228_v8  ;;  %p1933_p6 = scmp.lt.s32.totalorder %s2294_s20, %s1931_s24  ;;  %p1934_p12 = scmp.lt.s32.totalorder %s1932_s26, %s1926_s16 }
  0x5e   : > { %1697 = vmatprep.mubr.msk.f32.mxu1 %vm229_vm0, %v2208_v10  ;;  %p1929_p2 = pneg %p1928_p1 }
  0x5f   : > { %1591 = vmatmul.mubr.msk.f32.gmra.mxu0 %vm229_vm0, %v228_v8  ;;  %p1935_p3 = por %p1934_p12, %p1933_p6 }
  0x60   : > { %1704 = vmatprep.mubr.msk.f32.mxu0 %vm229_vm0, %v2204_v9 }
  0x61   : > { %p1936_p9 = pnand %p1935_p3, %p1929_p2 }
 0x11b   : > { %v302_v11 = vpop.f32.mrf.mxu0 }
 0x11d   : > { %v304_v12 = vpop.f32.mrf.mxu0  ;;  %v1692_v16 = vpop.f32.mrf.mxu1 }
 0x11f   : > { %v308_v13 = vpop.f32.mrf.mxu0  ;;  %v379_v18 = vpop.f32.mrf.mxu1 }
 0x120   : > { %1700 = vmatprep.subr.mxu0 %v308_v13 }
 0x121   : > { %v310_v14 = vpop.f32.mrf.mxu0  ;;  %1701 = vmatpush3.msra.mxu0 %v308_v13 }
 0x122   : > { %1693 = vmatprep.subr.mxu1 %v310_v14  ;;  %1702 = vmatprep.subr.mxu0 %v302_v11 }
 0x123   : > { %1694 = vmatpush3.msra.mxu1 %v310_v14  ;;  %1703 = vmatpush3.msra.mxu0 %v302_v11 }
 0x124   : > { %1695 = vmatprep.subr.mxu1 %v304_v12  ;;  %1705 = vmatmul.mubr.msk.f32.vlgmr.msra.gmra.mxu0 %vm229_vm0, %v2212_v15 }
 0x125   : > { %680 = vmatprep.subr.mxu0 %v2177_v1  ;;  %1696 = vmatpush3.msra.mxu1 %v304_v12 }
 0x126   : > { %681 = vmatpush1.msra.mxu0 %v2179_v2  ;;  %1698 = vmatmul.mubr.msk.f32.vlgmr.msra.gmra.mxu1 %vm229_vm0, %v2214_v17 }
 0x127   : > { %1707 = vmatprep.subr.mxu1 %v1692_v16  ;;  %682 = vmatprep.subr.mxu0 %v2181_v3 }
 0x128   : > { %1708 = vmatpush3.msra.mxu1 %v1692_v16  ;;  %683 = vmatpush1.msra.mxu0 %v2184_v4 }
 0x129   : > { %716 = vmatprep.mubr.f32.mxu0 %v2003_v0  ;;  %1709 = vmatprep.subr.mxu1 %v379_v18 }
 0x12a   : > { %1602 = vmatmul.mubr.msk.f32.vlgmr.msra.gmra.mxu0 %vm229_vm0, %v1600_v19  ;;  %1710 = vmatpush3.msra.mxu1 %v379_v18 }
 0x12b   : > { %1711 = vmatprep.mubr.msk.f32.mxu1 %vm229_vm0, %v2225_v20  ;;  %722 = vmatprep.mubr.f32.mxu0 %v2003_v0 }
 0x12c   : > { %1712 = vmatmul.mubr.msk.f32.vlgmr.msra.gmra.mxu1 %vm229_vm0, %v2228_v21  ;;  %1714 = vmatprep.subr.mxu1 %v2188_v6 }
 0x12d   : > { %1715 = vmatpush3.msra.mxu1 %v2188_v6  ;;  %1718 = vmatprep.mubr.msk.f32.mxu1 %vm229_vm0, %v1600_v19 }
 0x12e   : > { %1603 = vmatmul.mubr.msk.f32.gmra.mxu0 %vm229_vm0, %v1601_v22  ;;  %1716 = vmatprep.subr.mxu1 %v2190_v7 }
 0x12f   : > { %1717 = vmatpush3.msra.mxu1 %v2190_v7  ;;  %1732 = vmatprep.mubr.msk.f32.mxu0 %vm229_vm0, %v2204_v9 }
 0x130   : > { %1719 = vmatmul.mubr.msk.f32.vlgmr.msra.gmra.mxu1 %vm229_vm0, %v1601_v22 }
 0x131   : > { %1725 = vmatprep.mubr.msk.f32.mxu1 %vm229_vm0, %v2208_v10 }
 0x1e4   : > { %v1706_v23 = vpop.f32.mrf.mxu0 }
 0x1e6   : > { %v1699_v24 = vpop.f32.mrf.mxu1  ;;  %v546_v25 = vpop.f32.mrf.mxu0 }
 0x1e7   : > { %v552_v28 = vadd.f32 %v1706_v23, %v1699_v24 }
 0x1e8   : > { %v465_v26 = vpop.f32.mrf.mxu1 }
 0x1e9   : > { %v547_v31 = vadd.f32 %v546_v25, %v465_v26 }
 0x1ea   : > { %v718_v27 = vpop.f32.mrf.mxu0 }
 0x1ec   : > { %v1713_v29 = vpop.f32.mrf.mxu1  ;;  %v720_v30 = vpop.f32.mrf.mxu0 }
 0x1ed   : > { %v640_v32 = vadd.f32 %v1713_v29, %v552_v28 }
 0x1ee   : > { %v630_v33 = vpop.f32.mrf.mxu1  ;;  %v724_v34 = vpop.f32.mrf.mxu0 }
 0x1ef   : > { %642 = vst [vmem:[%s2250_s18 + $0x8] sm:$0xff] %v640_v32  ;;  %v639_v35 = vadd.f32 %v630_v33, %v547_v31  ;;  %1728 = vmatprep.subr.mxu0 %v724_v34 }
 0x1f0   : > { %v726_v36 = vpop.f32.mrf.mxu0  ;;  %1729 = vmatpush3.msra.mxu0 %v724_v34  ;;  %v1720_v37 = vpop.f32.mrf.mxu1 }
 0x1f1   : > { %641 = vst [vmem:[%s2250_s18] sm:$0xff] %v639_v35  ;;  %1721 = vmatprep.subr.mxu1 %v726_v36  ;;  %1730 = vmatprep.subr.mxu0 %v718_v27 }
 0x1f2   : > { %1722 = vmatpush3.msra.mxu1 %v726_v36  ;;  %1731 = vmatpush3.msra.mxu0 %v718_v27  ;;  %v795_v38 = vpop.f32.mrf.mxu1 }
 0x1f3   : > { %1723 = vmatprep.subr.mxu1 %v720_v30  ;;  %1733 = vmatmul.mubr.msk.f32.vlgmr.msra.gmra.mxu0 %vm229_vm0, %v2212_v15 }
 0x1f4   : > { %1095 = vmatprep.subr.mxu0 %v2177_v1  ;;  %1724 = vmatpush3.msra.mxu1 %v720_v30 }
 0x1f5   : > { %1096 = vmatpush1.msra.mxu0 %v2179_v2  ;;  %1726 = vmatmul.mubr.msk.f32.vlgmr.msra.gmra.mxu1 %vm229_vm0, %v2214_v17 }
 0x1f6   : > { %1735 = vmatprep.subr.mxu1 %v1720_v37  ;;  %1097 = vmatprep.subr.mxu0 %v2181_v3 }
 0x1f7   : > { %1736 = vmatpush3.msra.mxu1 %v1720_v37  ;;  %1098 = vmatpush1.msra.mxu0 %v2184_v4 }
 0x1f8   : > { %1131 = vmatprep.mubr.f32.mxu0 %v2003_v0  ;;  %1737 = vmatprep.subr.mxu1 %v795_v38 }
 0x1f9   : > { %1616 = vmatmul.mubr.msk.f32.vlgmr.msra.gmra.mxu0 %vm229_vm0, %v1614_v39  ;;  %1738 = vmatpush3.msra.mxu1 %v795_v38 }
 0x1fa   : > { %1739 = vmatprep.mubr.msk.f32.mxu1 %vm229_vm0, %v2225_v20  ;;  %1137 = vmatprep.mubr.f32.mxu0 %v2003_v0 }
 0x1fb   : > { %1740 = vmatmul.mubr.msk.f32.vlgmr.msra.gmra.mxu1 %vm229_vm0, %v2228_v21  ;;  %1742 = vmatprep.subr.mxu1 %v2188_v6 }
 0x1fc   : > { %1743 = vmatpush3.msra.mxu1 %v2188_v6  ;;  %1746 = vmatprep.mubr.msk.f32.mxu1 %vm229_vm0, %v1614_v39 }
 0x1fd   : > { %1617 = vmatmul.mubr.msk.f32.gmra.mxu0 %vm229_vm0, %v1615_v40  ;;  %1744 = vmatprep.subr.mxu1 %v2190_v7 }
 0x1fe   : > { %1745 = vmatpush3.msra.mxu1 %v2190_v7  ;;  %1760 = vmatprep.mubr.msk.f32.mxu0 %vm229_vm0, %v2204_v9 }
 0x1ff   : > { %1747 = vmatmul.mubr.msk.f32.vlgmr.msra.gmra.mxu1 %vm229_vm0, %v1615_v40 }
 0x200   : > { %1753 = vmatprep.mubr.msk.f32.mxu1 %vm229_vm0, %v2208_v10 }
 0x2b3   : > { %v1734_v41 = vpop.f32.mrf.mxu0 }
 0x2b5   : > { %v1727_v42 = vpop.f32.mrf.mxu1  ;;  %v961_v43 = vpop.f32.mrf.mxu0 }
 0x2b6   : > { %v967_v46 = vadd.f32 %v1734_v41, %v1727_v42 }
 0x2b7   : > { %v880_v44 = vpop.f32.mrf.mxu1 }
 0x2b8   : > { %v962_v49 = vadd.f32 %v961_v43, %v880_v44 }
 0x2b9   : > { %v1133_v45 = vpop.f32.mrf.mxu0 }
 0x2bb   : > { %v1741_v47 = vpop.f32.mrf.mxu1  ;;  %v1135_v48 = vpop.f32.mrf.mxu0 }
 0x2bc   : > { %v1054_v50 = vadd.f32 %v1741_v47, %v967_v46 }
 0x2bd   : > { %v1044_v51 = vpop.f32.mrf.mxu1  ;;  %v1139_v52 = vpop.f32.mrf.mxu0 }
 0x2be   : > { %1613 = vst [vmem:[%s2250_s18 + $0x18] sm:$0xff] %v1054_v50  ;;  %v1053_v53 = vadd.f32 %v1044_v51, %v962_v49  ;;  %1756 = vmatprep.subr.mxu0 %v1139_v52 }
 0x2bf   : > { %v1141_v54 = vpop.f32.mrf.mxu0  ;;  %1757 = vmatpush3.msra.mxu0 %v1139_v52  ;;  %v1748_v55 = vpop.f32.mrf.mxu1 }
 0x2c0   : > { %1612 = vst [vmem:[%s2250_s18 + $0x10] sm:$0xff] %v1053_v53  ;;  %1749 = vmatprep.subr.mxu1 %v1141_v54  ;;  %1758 = vmatprep.subr.mxu0 %v1133_v45 }
 0x2c1   : > { %1750 = vmatpush3.msra.mxu1 %v1141_v54  ;;  %1759 = vmatpush3.msra.mxu0 %v1133_v45  ;;  %v1210_v56 = vpop.f32.mrf.mxu1 }
 0x2c2   : > { %1751 = vmatprep.subr.mxu1 %v1135_v48  ;;  %1761 = vmatmul.mubr.msk.f32.vlgmr.msra.gmra.mxu0 %vm229_vm0, %v2212_v15 }
 0x2c3   : > { %1752 = vmatpush3.msra.mxu1 %v1135_v48 }
 0x2c4   : > { %1754 = vmatmul.mubr.msk.f32.vlgmr.msra.gmra.mxu1 %vm229_vm0, %v2214_v17  ;;  %1763 = vmatprep.subr.mxu1 %v1748_v55 }
 0x2c5   : > { %1764 = vmatpush3.msra.mxu1 %v1748_v55  ;;  %1767 = vmatprep.mubr.msk.f32.mxu1 %vm229_vm0, %v2225_v20 }
 0x2c6   : > { %1765 = vmatprep.subr.mxu1 %v1210_v56 }
 0x2c7   : > { %1766 = vmatpush3.msra.mxu1 %v1210_v56 }
 0x2c8   : > { %1768 = vmatmul.mubr.msk.f32.vlgmr.msra.gmra.mxu1 %vm229_vm0, %v2228_v21 }
 0x382   : > { %v1762_v57 = vpop.f32.mrf.mxu0 }
 0x384   : > { %v1755_v58 = vpop.f32.mrf.mxu1  ;;  %v1376_v60 = vpop.f32.mrf.mxu0 }
 0x385   : > { %v1382_v61 = vadd.f32 %v1762_v57, %v1755_v58 }
 0x386   : > { %v1295_v59 = vpop.f32.mrf.mxu1 }
 0x387   : > { %v1377_v63 = vadd.f32 %v1376_v60, %v1295_v59 }
 0x388   : > { %v1769_v62 = vpop.f32.mrf.mxu1 }
 0x389   : > { %v1469_v0 = vadd.f32 %v1769_v62, %v1382_v61 }
 0x38a   : > { %v1459_v1 = vpop.f32.mrf.mxu1 }
 0x38b   : > { %1627 = vst [vmem:[%s2250_s18 + $0x28] sm:$0xff] %v1469_v0  ;;  %v1468_v2 = vadd.f32 %v1459_v1, %v1377_v63 }
 0x38d   : > { %1626 = vst [vmem:[%s2250_s18 + $0x20] sm:$0xff] %v1468_v2 }
 0x38e   : > { %1939 = shalt.err (!%p1936_p9)
}
 0x38f   : > { %s1940_s22 = scalar_lea.hbm %s2299_s30, 768  ;;  %s1944_s29 = scalar_lea.hbm %s2347_s3, 1536 }
 0x390   : > { %p1941_p13 = scmp.ne.s32.totalorder %s2299_s30, %s1940_s22  ;;  %p1945_p4 = scmp.lt.s32.totalorder %s2299_s30, %s2347_s3 }
 0x391   : > { %p1946_p8 = scmp.lt.s32.totalorder %s1944_s29, %s1940_s22 }
 0x392   : > { %p1942_p5 = pnand %p1941_p13, %p2363_p10 }
 0x393   : > { %p1947_p7 = por %p1946_p8, %p1945_p4 }
 0x394   : > { %p1943_p0 = pneg %p1942_p5 }
 0x396   : > { %p1948_p11 = pnand %p1947_p7, %p1943_p0 }
 0x398   : > { %1951 = shalt.err (!%p1948_p11)
}
 0x399   : > { %s2005_s25 = smov 128   ;;  %s2006_s18 = smov 8  }
 0x39a   : > { %1782 = dma.vmem_to_hbm [thread:$0]  (%p2363_p10), %s2294_s20, 768, %s2299_s30, %s1474_s4, %s2005_s25, %s2005_s25, %s2006_s18  }
 0x39b PF: > { %s1503_s5 = sand.u32 1, %s1982_s12   ;;  %p2364_p1 = scmp.ne.s32.totalorder %s2353_s19, 0 }
 0x39c   : > { %p2365_p2 = scmp.ge.s32.totalorder %s1994_s15, 2  ;;  %s1504_s6 = scalar_lea.sflag [#allocation4], %s1503_s5 }
 0x39e   : > { %p1796_p6 = pnand %p2365_p2, %p2364_p1 }
 0x3a0   : > { %p1797_p12 = pneg %p1796_p6 }
 0x3a2   : > { %1977 = dma.done.wait (%p1797_p12), %s1504_s6, 768  }
 0x3a3   : > { %1979 = vsyncadd (%p1797_p12), %s1504_s6, 4294966528  ;;  %p17_p3 = scmp.ge.s32.totalorder %s2102_s9, 4   ;;  %s2366_s12 = smov %s1986_s13 }
 0x3a4   : > { %s2367_s13 = smov %s1990_s14  ;;  %s2368_s14 = smov %s2111_s17 }
 0x3a5   : > { %s2369_s15 = smov %s2102_s9  ;;  %19 = sbr.rel (!%p17_p3) target bundleno = 6 (0x6), region = 91 }
 0x3aa   :  { %1509 = vsyncpa [#allocation3], 1 }
 0x3ab   :  { %1511 = vsyncpa [#allocation3 + $0x1], 1 }
 0x3ac   :  { %1512 = vsyncpa [#allocation6], 1 }
 0x3ad   :  { %1513 = vsyncpa [#allocation4], 1 }
 0x3ae   :  { %1515 = vsyncpa [#allocation4 + $0x1], 1 }

</bundles_post_ra>
